<compile_context>
chip_gen: v7x
topology: tpu7x:2x2x1
jax: 0.10.0
libtpu: 0.0.40
codegen_flags: <defaults>
</compile_context>

<pallas_src>
import functools
import math

import jax
import jax.numpy as jnp
from jax.experimental import pallas as pl
from jax.experimental.pallas import tpu as pltpu

_MIB = 1024 * 1024


def _scale_mul_kernel(x_ref, s_ref, o_ref):
    # Pure broadcast row-multiply; the (1, lane) scale row broadcasts over
    # sublanes.  Mem-bound: only DMA shape / tile size / core sharding matter.
    o_ref[...] = x_ref[...] * s_ref[...]


@functools.lru_cache(maxsize=1)
def _tpu_budget():
    """Generation-aware (per-x-block byte budget, vmem_limit_bytes, n_tensorcores)."""
    try:
        vmem_cap = int(pltpu.get_tpu_info().vmem_capacity_bytes)
    except Exception:  # API unavailable / non-TPU tracing -> conservative default
        vmem_cap = 128 * _MIB
    if vmem_cap <= 64 * _MIB:
        # v7x: 64 MiB VMEM per TensorCore, 2 TCs/chip, ~3.2 TB/s HBM per TC.
        budget, n_tc = 6 * _MIB, 2
    else:
        # v5e / v6e: 128 MiB VMEM, 1 TC/chip.
        budget, n_tc = 8 * _MIB, 1
    # Footprint: 2x double-buffered x blocks + 2x out blocks + scale row.
    # Leave headroom for compiler-internal scratch; never request > half VMEM.
    vmem_limit = min(4 * budget + 16 * _MIB, vmem_cap // 2)
    return budget, vmem_limit, n_tc


def _pick_row_tile(rows, lane, itemsize, budget, n_tc):
    """Sublane-aligned row tile <= budget bytes; on multi-TC chips the grid
    length is a multiple of the core count so both TensorCores get balanced
    work; on single-TC chips a block that fits the budget is never split."""
    sub = max(8, 32 // itemsize)              # 8 for f32, 16 for bf16, 32 for int8
    tm_max = max((budget // (lane * itemsize)) // sub * sub, sub)

    g = -(-rows // tm_max)                    # grid steps required by the budget
    if n_tc > 1 and rows > n_tc * sub:
        g = max(g, n_tc)
        g = -(-g // n_tc) * n_tc              # even multiple of core count
    tm = -(-rows // g)                        # ceil(rows / g): balanced blocks
    tm = -(-tm // sub) * sub                  # sublane aligned
    tm = min(tm, tm_max)
    if tm >= rows:
        return rows                           # single block; full-dim block is legal
    return tm


def _scale_mul(x2d, scale_vec):
    """y[i, j] = x2d[i, j] * scale_vec[j], lane-dense and tiled."""
    n, d = x2d.shape
    itemsize = jnp.dtype(x2d.dtype).itemsize
    scale_vec = scale_vec.astype(x2d.dtype)

    # Lane-dense packing: fold k rows into the lane axis so the last dim is a
    # multiple of 128.  When n % k != 0, pad a handful of zero rows (one cheap
    # copy) instead of falling back to masked narrow stores.
    k = 1
    n_pad = n
    if d % 128 != 0:
        k = 128 // math.gcd(d, 128)           # smallest k with (k * d) % 128 == 0
        n_pad = -(-n // k) * k
    if n_pad != n:
        x2d = jnp.concatenate(
            [x2d, jnp.zeros((n_pad - n, d), dtype=x2d.dtype)], axis=0)
    rows, lane = n_pad // k, d * k
    xp = x2d.reshape(rows, lane)
    scale_row = (jnp.tile(scale_vec, k) if k > 1 else scale_vec).reshape(1, lane)

    budget, vmem_limit, n_tc = _tpu_budget()
    tm = _pick_row_tile(rows, lane, itemsize, budget, n_tc)
    grid = (pl.cdiv(rows, tm),)

    out = pl.pallas_call(
        _scale_mul_kernel,
        out_shape=jax.ShapeDtypeStruct((rows, lane), x2d.dtype),
        grid_spec=pltpu.PrefetchScalarGridSpec(
            num_scalar_prefetch=0,
            grid=grid,
            in_specs=[
                pl.BlockSpec((tm, lane), lambda i: (i, 0)),  # streaming x tile
                pl.BlockSpec((1, lane), lambda i: (0, 0)),   # resident scale row
            ],
            out_specs=pl.BlockSpec((tm, lane), lambda i: (i, 0)),
        ),
        # "parallel" lets Mosaic shard the row axis across TensorCores (v7x);
        # harmless on single-core chips.
        compiler_params=pltpu.CompilerParams(
            dimension_semantics=("parallel",),
            vmem_limit_bytes=vmem_limit,
        ),
    )(xp, scale_row)
    out = out.reshape(n_pad, d)
    if n_pad != n:
        out = out[:n]
    return out


class StdevScaleTransformPallas:
    """StdevScaleTransform: sigma = x.std(0); forward = x / sigma; inverse = x * sigma."""

    def __init__(self, x, *, min_pallas_elems: int = 256 * 1024):
        # One-time buffer setup (register_buffer equivalent) -> plain JAX.
        # Compute the scale in float32 for low-precision fit data so the
        # precomputed reciprocal doesn't add visible round-trip error.
        xf = x if jnp.issubdtype(x.dtype, jnp.floating) and x.dtype != jnp.bfloat16 \
            else x.astype(jnp.float32)
        # torch.Tensor.std defaults to the unbiased estimator (ddof=1).
        self.sigma = jnp.std(xf, axis=0, ddof=1)
        # Exact precomputed reciprocal: forward is a plain multiply.
        # NOTE: if a feature is constant in the fit data sigma == 0, so
        # inv_sigma == inf and forward yields inf/NaN — identical to PyTorch's
        # x / 0 behaviour (no epsilon is silently added).
        self.inv_sigma = 1.0 / self.sigma
        # Tensors smaller than this stay in fused XLA: below ~256K elements the
        # pallas_call launch + grid-step overhead dominates the broadcast mul.
        self.min_pallas_elems = min_pallas_elems

    @property
    def scale(self):
        return self.sigma

    def _apply(self, x, vec):
        if x.size < self.min_pallas_elems:
            return x * vec.astype(x.dtype)  # XLA fuses this for free
        lead = x.shape[:-1]
        y = _scale_mul(x.reshape(-1, x.shape[-1]), vec)
        return y.reshape(*lead, x.shape[-1])

    def forward(self, x):
        return self._apply(x, self.inv_sigma)

    def inverse(self, x):
        return self._apply(x, self.sigma)


if __name__ == "__main__":
    key = jax.random.PRNGKey(0)
    k1, k2 = jax.random.split(key)
    n, d = 16, 32  # small demo: seq=16, hidden=32 (packs lane-dense to (4, 128))

    x_fit = jax.random.normal(k1, (n, d), dtype=jnp.float32) * 2.0 + 1.0
    x = jax.random.normal(k2, (n, d), dtype=jnp.float32)

    # min_pallas_elems=0 so the Pallas kernel actually runs at this demo size
    # (in production the default keeps tiny tensors on the fused-XLA path).
    mod = StdevScaleTransformPallas(x_fit, min_pallas_elems=0)

    y = mod.forward(x)
    x_rec = mod.inverse(y)
    jax.block_until_ready((y, x_rec))

    # Correctness checks against plain-JAX reference.
    sigma_ref = jnp.std(x_fit, axis=0, ddof=1)
    ref_y = x / sigma_ref[None, :]
    assert jnp.allclose(mod.scale, sigma_ref, rtol=1e-6, atol=1e-6)
    assert jnp.allclose(y, ref_y, rtol=1e-5, atol=1e-6)
    assert jnp.allclose(x_rec, x, rtol=1e-5, atol=1e-6)

    print("KERNEL_OK")
</pallas_src>

<mosaic_0001>
module attributes {stable_mosaic.version = 11 : i64} {
  func.func @_scale_mul_kernel(%arg0: i32, %arg1: memref<4x128xf32, #tpu.memory_space<vmem>>, %arg2: memref<1x128xf32, #tpu.memory_space<vmem>>, %arg3: memref<4x128xf32, #tpu.memory_space<vmem>>) attributes {dimension_semantics = [#tpu.dimension_semantics<parallel>], iteration_bounds = array<i64: 1>, scalar_prefetch = 0 : i64, scratch_operands = 0 : i64, tpu.core_type = #tpu.core_type<tc>, window_params = [{transform_indices = @transform_0, window_bounds = array<i64: 4, 128>}, {pipeline_mode = #tpu.pipeline_mode<synchronous>, transform_indices = @transform_1, window_bounds = array<i64: 1, 128>}, {transform_indices = @transform_2, window_bounds = array<i64: 4, 128>}]} {
    %c0 = arith.constant 0 : index
    %c0_0 = arith.constant 0 : index
    %0 = vector.load %arg1[%c0, %c0_0] : memref<4x128xf32, #tpu.memory_space<vmem>>, vector<4x128xf32>
    %c0_1 = arith.constant 0 : index
    %c0_2 = arith.constant 0 : index
    %1 = vector.load %arg2[%c0_1, %c0_2] : memref<1x128xf32, #tpu.memory_space<vmem>>, vector<1x128xf32>
    %2 = vector.broadcast %1 : vector<1x128xf32> to vector<4x128xf32>
    %3 = arith.mulf %0, %2 : vector<4x128xf32>
    %c0_3 = arith.constant 0 : index
    %c0_4 = arith.constant 0 : index
    %4 = vector.load %arg3[%c0_3, %c0_4] : memref<4x128xf32, #tpu.memory_space<vmem>>, vector<4x128xf32>
    tpu.vector_store %arg3[%c0_3, %c0_4], %3 {strides = array<i32>} : memref<4x128xf32, #tpu.memory_space<vmem>>, vector<4x128xf32>,
    return
  }
  func.func @transform_0(%arg0: i32) -> (i32, i32) {
    %c0_i32 = arith.constant 0 : i32
    %c0_i32_0 = arith.constant 0 : i32
    return %arg0, %c0_i32 : i32, i32
  }
  func.func @transform_1(%arg0: i32) -> (i32, i32) {
    %c0_i32 = arith.constant 0 : i32
    %c0_i32_0 = arith.constant 0 : i32
    %c0_i32_1 = arith.constant 0 : i32
    return %c0_i32, %c0_i32_0 : i32, i32
  }
  func.func @transform_2(%arg0: i32) -> (i32, i32) {
    %c0_i32 = arith.constant 0 : i32
    %c0_i32_0 = arith.constant 0 : i32
    return %arg0, %c0_i32 : i32, i32
  }
}

</mosaic_0001>

<bundles_post_ra>
// kernel: tpu_custom_call.1
= control target key start
LH: loop header
LB: loop body
LE: loop exit
PB: predicated region body
PF: predicated region fallthrough
CT: control target
= control target key end

     0   :  { %7 = vsyncpa [#allocation3], 0  ;;  %s144_s0 = inlined_call_operand.hbm [shape: f32[4,128], index: 0, kind: input, shape index: {}]   ;;  %s145_s1 = inlined_call_operand.vmem [shape: f32[1,128], index: 1, kind: input, shape index: {}]   ;;  %s146_s2 = inlined_call_operand.hbm [shape: f32[4,128], index: 2, kind: output, shape index: {}]  }
   0x1   :  { %8 = vsyncpa [#allocation4], 0  ;;  %s100_s9 = smov [#allocation2]   ;;  %s52_s13 = scalar_lea.hbm %s144_s0, 64 }
   0x2   :  { %s15_s10 = sshll.u32 %s100_s9, 4  ;;  %p53_p0 = scmp.ne.s32.totalorder %s144_s0, %s52_s13  ;;  %s16_s10 = int_to_ptr.vmem [resolvable:$true] %s15_s10 }
   0x3   :  { %p56_p1 = scmp.lt.u32.totalorder %s52_s13, %s144_s0 }
   0x5   :  { %p58_p2 = pnand %p56_p1, %p53_p0 }
   0x7   :  { %61 = shalt.err (!%p58_p2)
}
   0x8   :  { %s62_s18 = scalar_lea.vmem %s16_s10, 64  ;;  %p67_p4 = scmp.lt.s32.totalorder %s16_s10, %s16_s10 }
   0x9   :  { %p63_p3 = scmp.ne.s32.totalorder %s16_s10, %s62_s18  ;;  %p68_p5 = scmp.lt.s32.totalorder %s62_s18, %s62_s18 }
   0xb   :  { %p69_p6 = por %p68_p5, %p67_p4 }
   0xd   :  { %p70_p7 = pnand %p69_p6, %p63_p3 }
   0xf   :  { %73 = shalt.err (!%p70_p7)
}
  0x10   :  { %18 = dma.hbm_to_vmem [thread:$0]  %s144_s0, 64, %s16_s10, [#allocation3]  }
  0x11   :  { %96 = dma.done.wait [#allocation3], 64  }
  0x12   :  { %97 = vsyncadd [#allocation3], 4294967232  ;;  %s101_s21 = smov [#allocation5]   ;;  %v24_v0 = vld [vmem:[#allocation2] sm:$0xf] }
  0x13   :  { %s40_s22 = sshll.u32 %s101_s21, 4  ;;  %v49_v1 = vld [vmem:[%s145_s1] ss:$0 sm:$0xff]  ;;  %s41_s22 = int_to_ptr.vmem [resolvable:$true] %s40_s22 }
  0x14   :  { %v32_v2 = vmul.f32 %v49_v1, %v24_v0  ;;  %s74_s25 = scalar_lea.vmem %s41_s22, 64  ;;  %p79_p9 = scmp.lt.s32.totalorder %s41_s22, %s41_s22 }
  0x15   :  { %p75_p8 = scmp.ne.s32.totalorder %s41_s22, %s74_s25  ;;  %p80_p10 = scmp.lt.s32.totalorder %s74_s25, %s74_s25 }
  0x16   :  { %33 = vst [vmem:[#allocation5] sm:$0xf] %v32_v2 }
  0x17   :  { %p81_p11 = por %p80_p10, %p79_p9 }
  0x19   :  { %p82_p12 = pnand %p81_p11, %p75_p8 }
  0x1b   :  { %85 = shalt.err (!%p82_p12)
}
  0x1c   :  { %s86_s27 = scalar_lea.hbm %s146_s2, 64 }
  0x1d   :  { %p87_p13 = scmp.ne.s32.totalorder %s146_s2, %s86_s27  ;;  %p90_p0 = scmp.lt.u32.totalorder %s86_s27, %s146_s2 }
  0x1f   :  { %p92_p1 = pnand %p90_p0, %p87_p13 }
  0x21   :  { %95 = shalt.err (!%p92_p1)
}
  0x22   :  { %43 = dma.vmem_to_hbm [thread:$0]  %s41_s22, 64, %s146_s2, [#allocation4]  }
  0x23   :  { %98 = dma.done.wait [#allocation4], 64  }
  0x24   :  { %99 = vsyncadd [#allocation4], 4294967232 }
  0x25   :  { %47 = vsyncpa [#allocation3], 1 }
  0x26   :  { %48 = vsyncpa [#allocation4], 1 }

</bundles_post_ra>
